<compile_context>
chip_gen: v6e
topology: v6e:2x2x1
jax: 0.10.0
libtpu: 0.0.40
codegen_flags: <defaults>
</compile_context>

<pallas_src>
import functools

import jax
import jax.numpy as jnp
from jax import lax
from jax.experimental import pallas as pl
from jax.experimental.pallas import tpu as pltpu

_LANE = 128
_NEG_BIG = -1e30                 # "-inf" that cannot create NaNs
_MIB = 1024 * 1024


def _round_up(x, m):
    return (x + m - 1) // m * m


# ---------------------------------------------------------------------------
# Hardware / feature probes (cached, pure Python, run outside any trace)
# ---------------------------------------------------------------------------
@functools.lru_cache(maxsize=None)
def _vmem_capacity_bytes():
    """Physical VMEM per TensorCore (128 MiB v5e/v6e, 64 MiB v7x)."""
    try:
        return int(pltpu.get_tpu_info().vmem_capacity_bytes)
    except Exception:
        return 64 * _MIB          # conservative fallback


@functools.lru_cache(maxsize=None)
def _single_buffer_supported():
    """True iff BlockSpec(pipeline_mode=pl.Buffered(1)) compiles on this stack."""
    try:
        buf = pl.Buffered(1)

        def _probe(a_ref, b_ref, o_ref):
            o_ref[...] = a_ref[...] + b_ref[...]

        fn = pl.pallas_call(
            _probe,
            out_shape=jax.ShapeDtypeStruct((8, _LANE), jnp.float32),
            grid=(1,),
            in_specs=[pl.BlockSpec((8, _LANE), lambda i: (0, 0)),
                      pl.BlockSpec((8, _LANE), lambda i: (0, 0),
                                   pipeline_mode=buf)],
            out_specs=pl.BlockSpec((8, _LANE), lambda i: (0, 0)),
        )
        z = jnp.zeros((8, _LANE), jnp.float32)
        jax.jit(fn).lower(z, z).compile()
        return True
    except Exception:
        return False


def _resident_spec(shape, index_map):
    """BlockSpec for a grid-invariant operand; single-buffered when supported."""
    if _single_buffer_supported():
        return pl.BlockSpec(shape, index_map, pipeline_mode=pl.Buffered(1))
    return pl.BlockSpec(shape, index_map)


# ---------------------------------------------------------------------------
# Kernels
# ---------------------------------------------------------------------------
def _fused_kernel(x_ref, w_ref, b_ref, o_ref):
    # x: (tr, d_model)  w: (vocab_p, d_model)  b: (1, vocab_p)  o: (tr, vocab_p)
    logits = lax.dot_general(
        x_ref[...], w_ref[...],
        dimension_numbers=(((1,), (1,)), ((), ())),   # contract on d_model
        preferred_element_type=jnp.float32)
    logits = logits + b_ref[...]
    m = jnp.max(logits, axis=-1, keepdims=True)
    shifted = logits - m
    lse = jnp.log(jnp.sum(jnp.exp(shifted), axis=-1, keepdims=True))
    o_ref[...] = (shifted - lse).astype(o_ref.dtype)


def _stats_kernel(x_ref, w_ref, b_ref, logits_ref, lse_ref, m_sc, l_sc):
    # Streams one (vb, d_model) block of W per step; keeps running max and
    # sum-exp per row tile in VMEM scratch (online softmax statistics).
    j = pl.program_id(1)

    @pl.when(j == 0)
    def _():
        m_sc[...] = jnp.full_like(m_sc, -jnp.inf)
        l_sc[...] = jnp.zeros_like(l_sc)

    blk = lax.dot_general(
        x_ref[...], w_ref[...],
        dimension_numbers=(((1,), (1,)), ((), ())),
        preferred_element_type=jnp.float32)
    blk = blk + b_ref[...]
    logits_ref[...] = blk.astype(logits_ref.dtype)

    m_prev = m_sc[...]
    m_new = jnp.maximum(m_prev, jnp.max(blk, axis=-1, keepdims=True))
    l_sc[...] = (l_sc[...] * jnp.exp(m_prev - m_new)
                 + jnp.sum(jnp.exp(blk - m_new), axis=-1, keepdims=True))
    m_sc[...] = m_new

    @pl.when(j == pl.num_programs(1) - 1)
    def _():
        lse_ref[...] = m_sc[...] + jnp.log(l_sc[...])


def _normalize_kernel(logits_ref, lse_ref, o_ref):
    o_ref[...] = (logits_ref[...].astype(jnp.float32)
                  - lse_ref[...]).astype(o_ref.dtype)


# ---------------------------------------------------------------------------
# Jitted implementation (all tiling decisions are static arguments)
# ---------------------------------------------------------------------------
@functools.partial(
    jax.jit, static_argnames=("tr", "vb", "vn", "use_fused", "vmem_limit"))
def _projection_impl(x, weight, bias, *, tr, vb, vn, use_fused, vmem_limit):
    batch, seq, d_model = x.shape
    vocab = weight.shape[0]
    rows = batch * seq

    x_item = jnp.dtype(x.dtype).itemsize
    w_item = jnp.dtype(weight.dtype).itemsize
    o_item = x_item

    rows_p = _round_up(rows, tr)
    x2d = x.reshape(rows, d_model)
    if rows_p != rows:
        x2d = jnp.pad(x2d, ((0, rows_p - rows), (0, 0)))
    n_rt = rows_p // tr

    vocab_p = _round_up(vocab, _LANE) if use_fused else _round_up(vocab, vb)
    w, b = weight, bias
    if vocab_p != vocab:
        w = jnp.pad(w, ((0, vocab_p - vocab), (0, 0)))
        b = jnp.pad(b, (0, vocab_p - vocab), constant_values=_NEG_BIG)
    b2d = b.reshape(1, vocab_p).astype(jnp.float32)

    if use_fused:
        out2d = pl.pallas_call(
            _fused_kernel,
            out_shape=jax.ShapeDtypeStruct((rows_p, vocab_p), x.dtype),
            grid_spec=pltpu.PrefetchScalarGridSpec(
                num_scalar_prefetch=0,
                grid=(n_rt,),
                in_specs=[
                    pl.BlockSpec((tr, d_model), lambda i: (i, 0)),
                    _resident_spec((vocab_p, d_model), lambda i: (0, 0)),
                    _resident_spec((1, vocab_p), lambda i: (0, 0)),
                ],
                out_specs=pl.BlockSpec((tr, vocab_p), lambda i: (i, 0)),
            ),
            compiler_params=pltpu.CompilerParams(
                dimension_semantics=("parallel",),
                vmem_limit_bytes=vmem_limit),
            cost_estimate=pl.CostEstimate(
                flops=2 * rows_p * d_model * vocab_p,
                transcendentals=rows_p * vocab_p,
                bytes_accessed=(rows_p * d_model * x_item
                                + vocab_p * d_model * w_item
                                + rows_p * vocab_p * o_item)),
        )(x2d, w, b2d)
    else:
        nv = vocab_p // vb
        li_dtype = x.dtype                   # intermediate logits dtype
        li_item = jnp.dtype(li_dtype).itemsize

        logits, lse = pl.pallas_call(
            _stats_kernel,
            out_shape=(jax.ShapeDtypeStruct((rows_p, vocab_p), li_dtype),
                       jax.ShapeDtypeStruct((rows_p, 1), jnp.float32)),
            grid_spec=pltpu.PrefetchScalarGridSpec(
                num_scalar_prefetch=0,
                grid=(n_rt, nv),
                in_specs=[
                    pl.BlockSpec((tr, d_model), lambda i, j: (i, 0)),
                    pl.BlockSpec((vb, d_model), lambda i, j: (j, 0)),
                    pl.BlockSpec((1, vb), lambda i, j: (0, j)),
                ],
                out_specs=(
                    pl.BlockSpec((tr, vb), lambda i, j: (i, j)),
                    pl.BlockSpec((tr, 1), lambda i, j: (i, 0)),
                ),
                scratch_shapes=[pltpu.VMEM((tr, 1), jnp.float32),
                                pltpu.VMEM((tr, 1), jnp.float32)],
            ),
            compiler_params=pltpu.CompilerParams(
                dimension_semantics=("parallel", "arbitrary"),
                vmem_limit_bytes=vmem_limit),
            cost_estimate=pl.CostEstimate(
                flops=2 * rows_p * d_model * vocab_p,
                transcendentals=rows_p * vocab_p,
                bytes_accessed=(rows_p * d_model * x_item
                                + n_rt * vocab_p * d_model * w_item
                                + rows_p * vocab_p * li_item + rows_p * 4)),
        )(x2d, w, b2d)

        # Normalize: pure HBM-bound elementwise pass with wide lane-dense
        # blocks; the logits buffer is aliased to the output (same shape &
        # dtype), so no extra rows*vocab HBM allocation.
        out2d = pl.pallas_call(
            _normalize_kernel,
            out_shape=jax.ShapeDtypeStruct((rows_p, vocab_p), x.dtype),
            grid_spec=pltpu.PrefetchScalarGridSpec(
                num_scalar_prefetch=0,
                grid=(n_rt, vocab_p // vn),
                in_specs=[
                    pl.BlockSpec((tr, vn), lambda i, j: (i, j)),
                    pl.BlockSpec((tr, 1), lambda i, j: (i, 0)),
                ],
                out_specs=pl.BlockSpec((tr, vn), lambda i, j: (i, j)),
            ),
            compiler_params=pltpu.CompilerParams(
                dimension_semantics=("parallel", "parallel"),
                vmem_limit_bytes=vmem_limit),
            input_output_aliases={0: 0},
        )(logits, lse)

    out2d = out2d[:rows, :vocab]
    return out2d.reshape(batch, seq, vocab)


# ---------------------------------------------------------------------------
# Public wrapper: static tiling plan computed in Python, then jitted call
# ---------------------------------------------------------------------------
def projection_layer(x, weight, bias, *, tile_rows=512, vocab_block=None,
                     force_vocab_tiled=False):
    """log_softmax(x @ weight.T + bias, axis=-1).

    x: (batch, seq, d_model); weight: (vocab, d_model); bias: (vocab,).
    Returns (batch, seq, vocab), matching the PyTorch module.
    """
    batch, seq, d_model = x.shape
    vocab = weight.shape[0]
    rows = batch * seq

    x_item = jnp.dtype(x.dtype).itemsize
    w_item = jnp.dtype(weight.dtype).itemsize
    o_item = x_item
    li_item = o_item                         # intermediate logits stored in x.dtype

    # ---- generation-aware VMEM budgets ----
    vmem_cap = _vmem_capacity_bytes()        # 128 MiB v5e/v6e, 64 MiB v7x
    vmem_limit = min((vmem_cap * 3) // 4, 100 * _MIB)
    fused_budget = max(vmem_limit - 8 * _MIB, 16 * _MIB)
    step_budget = (vmem_limit * 9) // 10

    single_buf = _single_buffer_supported()  # warms the probe cache too

    # ---- row tile: sublane-packed, >=2 tiles when possible (v7x megacore) ----
    sub = 16 if x_item == 2 else 8
    half_rows = _round_up((rows + 1) // 2, sub)
    tr = max(sub, min(int(tile_rows) // sub * sub, half_rows))

    # ---- fused (whole-W-resident) vs vocab-tiled decision ----
    vocab_p128 = _round_up(vocab, _LANE)
    w_bufs = 1 if single_buf else 2
    fused_vmem = (w_bufs * vocab_p128 * d_model * w_item   # resident W
                  + w_bufs * vocab_p128 * 4                # resident bias (f32)
                  + 2 * tr * d_model * x_item              # x blocks
                  + 2 * tr * vocab_p128 * o_item           # out blocks
                  + 3 * tr * vocab_p128 * 4)               # f32 softmax temps
    use_fused = (not force_vocab_tiled) and fused_vmem <= fused_budget

    vb = vn = _LANE
    if not use_fused:
        cap = (_round_up(int(vocab_block), _LANE) if vocab_block is not None
               else 4096)
        # Size the vocab block from the per-step budget; shrink the row tile
        # only if even a 128-wide W block would not fit (huge d_model).
        while True:
            fixed = 2 * tr * d_model * x_item + 8 * tr * 4 + (64 << 10)
            per_vb = 2 * (d_model * w_item + tr * li_item + tr * 4) + 8
            vb_fit = (step_budget - fixed) // per_vb if step_budget > fixed else 0
            vb_fit = vb_fit // _LANE * _LANE
            if vb_fit >= _LANE or tr <= sub:
                break
            tr = max(sub, (tr // 2) // sub * sub)
        vb = max(_LANE, min(vb_fit, cap, vocab_p128))
        vocab_p = _round_up(vocab, vb)
        nv = vocab_p // vb
        # Normalize pass: widest lane-dense block (multiple of vb dividing vocab_p).
        vn = vb
        for d in range(nv, 0, -1):
            if nv % d == 0:
                cand = vb * d
                if 2 * tr * cand * (li_item + o_item) + 8 * tr * 4 <= step_budget:
                    vn = cand
                    break

    # TODO(synk): for rows >> tr, a (vocab-outer, rows-inner) grid would stream
    # W exactly once per call; kept rows-outer here for megacore parallelism.
    return _projection_impl(x, weight, bias, tr=int(tr), vb=int(vb), vn=int(vn),
                            use_fused=bool(use_fused), vmem_limit=int(vmem_limit))


# ---------------------------------------------------------------------------
# Self-test
# ---------------------------------------------------------------------------
if __name__ == "__main__":
    key = jax.random.PRNGKey(0)

    # --- Test 1: canonical small shapes; exercises the fused whole-vocab path.
    batch, seq, d_model, vocab_size = 2, 8, 32, 128
    kx, kw, kb = jax.random.split(key, 3)
    bound = 1.0 / (d_model ** 0.5)
    weight = jax.random.uniform(kw, (vocab_size, d_model), jnp.float32,
                                minval=-bound, maxval=bound)
    bias = jax.random.uniform(kb, (vocab_size,), jnp.float32,
                              minval=-bound, maxval=bound)
    x = jax.random.normal(kx, (batch, seq, d_model), jnp.float32)

    out = projection_layer(x, weight, bias)
    jax.block_until_ready(out)
    ref = jax.nn.log_softmax(x @ weight.T + bias, axis=-1)
    assert out.shape == (batch, seq, vocab_size)
    assert jnp.allclose(out, ref, atol=1e-4, rtol=1e-5), "fused path mismatch"

    # --- Test 2: non-multiple rows + non-128-multiple vocab; forces the
    # vocab-tiled online-softmax path (what large vocab sizes use).
    batch2, seq2, vocab2 = 2, 7, 320
    kx2, kw2, kb2 = jax.random.split(jax.random.PRNGKey(1), 3)
    weight2 = jax.random.uniform(kw2, (vocab2, d_model), jnp.float32,
                                 minval=-bound, maxval=bound)
    bias2 = jax.random.uniform(kb2, (vocab2,), jnp.float32,
                               minval=-bound, maxval=bound)
    x2 = jax.random.normal(kx2, (batch2, seq2, d_model), jnp.float32)

    out2 = projection_layer(x2, weight2, bias2, vocab_block=128,
                            force_vocab_tiled=True)
    jax.block_until_ready(out2)
    ref2 = jax.nn.log_softmax(x2 @ weight2.T + bias2, axis=-1)
    assert out2.shape == (batch2, seq2, vocab2)
    assert jnp.allclose(out2, ref2, atol=1e-4, rtol=1e-5), "tiled path mismatch"

    print("KERNEL_OK")
</pallas_src>

<mosaic_0001>
module attributes {stable_mosaic.version = 11 : i64} {
  func.func @_fused_kernel(%arg0: i32, %arg1: memref<8x32xf32, #tpu.memory_space<vmem>>, %arg2: memref<128x32xf32, #tpu.memory_space<vmem>>, %arg3: memref<1x128xf32, #tpu.memory_space<vmem>>, %arg4: memref<8x128xf32, #tpu.memory_space<vmem>>) attributes {dimension_semantics = [#tpu.dimension_semantics<parallel>], iteration_bounds = array<i64: 2>, scalar_prefetch = 0 : i64, scratch_operands = 0 : i64, tpu.core_type = #tpu.core_type<tc>, window_params = [{transform_indices = @transform_0, window_bounds = array<i64: 8, 32>}, {pipeline_mode = #tpu.pipeline_mode<synchronous>, transform_indices = @transform_1, window_bounds = array<i64: 128, 32>}, {pipeline_mode = #tpu.pipeline_mode<synchronous>, transform_indices = @transform_2, window_bounds = array<i64: 1, 128>}, {transform_indices = @transform_3, window_bounds = array<i64: 8, 128>}]} {
    %c0 = arith.constant 0 : index
    %c0_0 = arith.constant 0 : index
    %0 = vector.load %arg1[%c0, %c0_0] : memref<8x32xf32, #tpu.memory_space<vmem>>, vector<8x32xf32>
    %c0_1 = arith.constant 0 : index
    %c0_2 = arith.constant 0 : index
    %1 = vector.load %arg2[%c0_1, %c0_2] : memref<128x32xf32, #tpu.memory_space<vmem>>, vector<128x32xf32>
    %cst = arith.constant dense<0.000000e+00> : vector<8x128xf32>
    %2 = tpu.matmul %0, %1, %cst {dimension_numbers = #tpu.dot_dimension_numbers<[1], [1], [0], [0], [0, 0, 1, 0], [], []>} : vector<8x32xf32>, vector<128x32xf32>, vector<8x128xf32> -> vector<8x128xf32>
    %c0_3 = arith.constant 0 : index
    %c0_4 = arith.constant 0 : index
    %3 = vector.load %arg3[%c0_3, %c0_4] : memref<1x128xf32, #tpu.memory_space<vmem>>, vector<1x128xf32>
    %4 = vector.broadcast %3 : vector<1x128xf32> to vector<8x128xf32>
    %5 = arith.addf %2, %4 : vector<8x128xf32>
    %cst_5 = arith.constant dense<0xFF800000> : vector<8xf32>
    %6 = vector.multi_reduction <maximumf>, %5, %cst_5 [1] : vector<8x128xf32> to vector<8xf32>
    %7 = vector.shape_cast %6 : vector<8xf32> to vector<8x1xf32>
    %8 = vector.broadcast %7 : vector<8x1xf32> to vector<8x128xf32>
    %9 = arith.subf %5, %8 : vector<8x128xf32>
    %10 = math.exp %9 : vector<8x128xf32>
    %cst_6 = arith.constant dense<0.000000e+00> : vector<8xf32>
    %11 = vector.multi_reduction <add>, %10, %cst_6 [1] : vector<8x128xf32> to vector<8xf32>
    %12 = vector.shape_cast %11 : vector<8xf32> to vector<8x1xf32>
    %13 = math.log %12 : vector<8x1xf32>
    %14 = vector.broadcast %13 : vector<8x1xf32> to vector<8x128xf32>
    %15 = arith.subf %9, %14 : vector<8x128xf32>
    %c0_7 = arith.constant 0 : index
    %c0_8 = arith.constant 0 : index
    %16 = vector.load %arg4[%c0_7, %c0_8] : memref<8x128xf32, #tpu.memory_space<vmem>>, vector<8x128xf32>
    tpu.vector_store %arg4[%c0_7, %c0_8], %15 {strides = array<i32>} : memref<8x128xf32, #tpu.memory_space<vmem>>, vector<8x128xf32>,
    return
  }
  func.func @transform_0(%arg0: i32) -> (i32, i32) {
    %c0_i32 = arith.constant 0 : i32
    %c0_i32_0 = arith.constant 0 : i32
    return %arg0, %c0_i32 : i32, i32
  }
  func.func @transform_1(%arg0: i32) -> (i32, i32) {
    %c0_i32 = arith.constant 0 : i32
    %c0_i32_0 = arith.constant 0 : i32
    %c0_i32_1 = arith.constant 0 : i32
    return %c0_i32, %c0_i32_0 : i32, i32
  }
  func.func @transform_2(%arg0: i32) -> (i32, i32) {
    %c0_i32 = arith.constant 0 : i32
    %c0_i32_0 = arith.constant 0 : i32
    %c0_i32_1 = arith.constant 0 : i32
    return %c0_i32, %c0_i32_0 : i32, i32
  }
  func.func @transform_3(%arg0: i32) -> (i32, i32) {
    %c0_i32 = arith.constant 0 : i32
    %c0_i32_0 = arith.constant 0 : i32
    return %arg0, %c0_i32 : i32, i32
  }
}

</mosaic_0001>

<bundles_post_ra>
// kernel: _projection_impl.1
= control target key start
LH: loop header
LB: loop body
LE: loop exit
PB: predicated region body
PF: predicated region fallthrough
CT: control target
= control target key end

     0   :  { %8 = vsyncpa [#allocation3], 0  ;;  %s761_s0 = inlined_call_operand.vmem [shape: f32[16,32], index: 0, kind: input, shape index: {}]   ;;  %s762_s1 = inlined_call_operand.vmem [shape: f32[128,32], index: 1, kind: input, shape index: {}]   ;;  %s763_s2 = inlined_call_operand.vmem [shape: f32[1,128], index: 2, kind: input, shape index: {}]   ;;  %s764_s3 = inlined_call_operand.hbm [shape: f32[16,128], index: 3, kind: output, shape index: {}]  }
   0x1   :  { %10 = vsyncpa [#allocation3 + $0x1], 0  ;;  %s606_s12 = smov 0   ;;  %s608_s13 = smov 0  }
   0x2   :  { %s610_s14 = smov 0   ;;  %s612_s15 = smov 0  }
   0x3 LB: > { %s627_s16 = sadd.s32 4294967295, %s581_s15   ;;  %s396_s17 = sadd.s32 4294967294, %s581_s15   ;;  %s581_s15 = sphi %s612_s15, %s770_s15   ;;  %s577_s14 = sphi %s610_s14, %s769_s14   ;;  %s573_s13 = sphi %s608_s13, %s768_s13   ;;  %s569_s12 = sphi %s606_s12, %s767_s12  }
   0x4   : > { %s631_s18 = sadd.s32 1, %s581_s15   ;;  %s91_s19 = sadd.s32 1, %s577_s14 }
   0x5   : > { %s88_s20 = ssub.s32 %s581_s15, %s631_s18  ;;  %p101_p0 = scmp.ne.s32.totalorder %s577_s14, %s573_s13 }
   0x6   : > { %p89_p1 = scmp.eq.s32.totalorder %s88_s20, 0  ;;  %p102_p2 = scmp.eq.s32.totalorder %s627_s16, 1 }
   0x7   : > { %p107_p3 = scmp.ne.s32.totalorder %s573_s13, %s569_s12  ;;  %p108_p4 = scmp.eq.s32.totalorder %s396_s17, 1 }
   0x8   : > { %s642_s21 = scalar_select %p89_p1, %s577_s14, %s91_s19  }
   0x9   : > { %p644_p5 = por %p102_p2, %p101_p0  ;;  %p648_p6 = por %p108_p4, %p107_p3 }
   0xa   : > { %p399_p7 = scmp.ge.s32.totalorder %s581_s15, 1  ;;  %p139_p8 = scmp.lt.s32.totalorder %s581_s15, 3 }
   0xc   : > { %p140_p9 = pnand %p399_p7, %p139_p8 }
   0xd   : > { %p162_p10 = scmp.lt.s32.totalorder (!%p140_p9), %s627_s16, 1  ;;  %s159_s27 = sand.u32 (!%p140_p9), 1, %s573_s13  }
   0xe   : > { %143 = sbr.rel (%p140_p9) target bundleno = 604 (0x25c), region = 32  ;;  %s400_s28 = sshll.u32 (!%p140_p9), %s159_s27, 3 }
   0xf   : > { %s421_s29 = sshll.u32 (!%p140_p9), %s627_s16, 7  ;;  %s161_s30 = scalar_lea.vmem (!%p140_p9), [#allocation2], %s400_s28 }
  0x10   : > { %s337_s4 = sshll.u32 (!%p140_p9), %s161_s30, 4  ;;  %s324_s8 = scalar_lea.sflag (!%p140_p9), [#allocation3], %s159_s27  ;;  %s338_s4 = int_to_ptr.vmem [resolvable:$true] %s337_s4 }
  0x11   : > { %s521_s9 = scalar_lea.vmem (!%p140_p9), %s338_s4, 128 }
  0x12   : > { %p522_p11 = scmp.ne.s32.totalorder (!%p140_p9), %s338_s4, %s521_s9 }
  0x13   : > { %v182_v0 = vld [vmem:[%s762_s1 + $0x78] sm:$0xff]  ;;  %vm190_vm0 = vcmask 261120   ;;  %v583_v1 = vmov 0.0   ;;  %vm584_vm1 = vmmov 0   ;;  %v181_v2 = vld [vmem:[%s762_s1 + $0x70] sm:$0xff]  ;;  %v180_v3 = vld [vmem:[%s762_s1 + $0x68] sm:$0xff] }
  0x14   : > { %441 = vmatprep.subr.mxu0 %v583_v1  ;;  %473 = vmatprep.mubr.msk.f32.mxu0 %vm584_vm1, %v583_v1  ;;  %v179_v4 = vld [vmem:[%s762_s1 + $0x60] sm:$0xff]  ;;  %v178_v5 = vld [vmem:[%s762_s1 + $0x58] sm:$0xff]  ;;  %v177_v6 = vld [vmem:[%s762_s1 + $0x50] sm:$0xff]  ;;  %s163_s7 = scalar_select %p162_p10, %s627_s16, 1 }
  0x15   : > { %442 = vmatpush3.xpose.msk.msra.mxu0 %vm190_vm0, %v182_v0  ;;  %v176_v7 = vld [vmem:[%s762_s1 + $0x48] sm:$0xff]  ;;  %v175_v8 = vld [vmem:[%s762_s1 + $0x40] sm:$0xff]  ;;  %v174_v9 = vld [vmem:[%s762_s1 + $0x38] sm:$0xff]  ;;  %p523_p12 = pnand %p522_p11, %p644_p5 }
  0x16   : > { %443 = vmatprep.subr.mxu0 %v583_v1  ;;  %v173_v10 = vld [vmem:[%s762_s1 + $0x30] sm:$0xff]  ;;  %v172_v11 = vld [vmem:[%s762_s1 + $0x28] sm:$0xff]  ;;  %v171_v12 = vld [vmem:[%s762_s1 + $0x20] sm:$0xff]  ;;  %s401_s10 = sshll.u32 %s163_s7, 3  ;;  %s335_s7 = scalar_lea.hbm %s764_s3, %s421_s29 }
  0x17   : > { %v170_v13 = vld [vmem:[%s762_s1 + $0x18] sm:$0xff]  ;;  %v169_v14 = vld [vmem:[%s762_s1 + $0x10] sm:$0xff]  ;;  %v168_v15 = vld [vmem:[%s762_s1 + $0x8] sm:$0xff]  ;;  %s165_s24 = scalar_lea.vmem %s761_s0, %s401_s10  ;;  %p524_p13 = pneg %p523_p12 }
  0x18   : > { %v167_v16 = vld [vmem:[%s762_s1] sm:$0xff]  ;;  %s585_s10 = smov [#allocation2]  }
  0x19   : > { %444 = vmatpush3.xpose.msk.msra.mxu0 %vm190_vm0, %v181_v2  ;;  %v166_v17 = vld [vmem:[%s165_s24] sm:$0xff]  ;;  %s525_s11 = sshll.u32 %s585_s10, 4  ;;  %s526_s11 = int_to_ptr.vmem [resolvable:$false] %s525_s11 }
  0x1a   : > { %445 = vmatprep.subr.mxu0 %v583_v1  ;;  %v402_v18 = vld [vmem:[%s763_s2] ss:$0 sm:$0xff]  ;;  %s527_s16 = scalar_lea.vmem %s526_s11, 256  ;;  %p528_p0 = scmp.lt.s32.totalorder %s338_s4, %s526_s11 }
  0x1b   : > { %p529_p1 = scmp.lt.s32.totalorder %s527_s16, %s521_s9 }
  0x1d   : > { %446 = vmatpush3.xpose.msk.msra.mxu0 %vm190_vm0, %v180_v3  ;;  %p530_p2 = por %p529_p1, %p528_p0 }
  0x1e   : > { %447 = vmatprep.subr.mxu0 %v583_v1 }
  0x1f   : > { %p531_p3 = pnand %p530_p2, %p524_p13 }
  0x21   : > { %448 = vmatpush3.xpose.msk.msra.mxu0 %vm190_vm0, %v179_v4 }
  0x22   : > { %449 = vmatprep.subr.mxu0 %v583_v1 }
  0x25   : > { %450 = vmatpush3.xpose.msk.msra.mxu0 %vm190_vm0, %v178_v5 }
  0x26   : > { %451 = vmatprep.subr.mxu0 %v583_v1 }
  0x29   : > { %452 = vmatpush3.xpose.msk.msra.mxu0 %vm190_vm0, %v177_v6 }
  0x2a   : > { %453 = vmatprep.subr.mxu0 %v583_v1 }
  0x2d   : > { %454 = vmatpush3.xpose.msk.msra.mxu0 %vm190_vm0, %v176_v7 }
  0x2e   : > { %455 = vmatprep.subr.mxu0 %v583_v1 }
  0x31   : > { %456 = vmatpush3.xpose.msk.msra.mxu0 %vm190_vm0, %v175_v8 }
  0x32   : > { %457 = vmatprep.subr.mxu0 %v583_v1 }
  0x35   : > { %458 = vmatpush3.xpose.msk.msra.mxu0 %vm190_vm0, %v174_v9 }
  0x36   : > { %459 = vmatprep.subr.mxu0 %v583_v1 }
  0x39   : > { %460 = vmatpush3.xpose.msk.msra.mxu0 %vm190_vm0, %v173_v10 }
  0x3a   : > { %461 = vmatprep.subr.mxu0 %v583_v1 }
  0x3d   : > { %462 = vmatpush3.xpose.msk.msra.mxu0 %vm190_vm0, %v172_v11 }
  0x3e   : > { %463 = vmatprep.subr.mxu0 %v583_v1 }
  0x41   : > { %464 = vmatpush3.xpose.msk.msra.mxu0 %vm190_vm0, %v171_v12 }
  0x42   : > { %465 = vmatprep.subr.mxu0 %v583_v1 }
  0x45   : > { %466 = vmatpush3.xpose.msk.msra.mxu0 %vm190_vm0, %v170_v13 }
  0x46   : > { %467 = vmatprep.subr.mxu0 %v583_v1 }
  0x49   : > { %468 = vmatpush3.xpose.msk.msra.mxu0 %vm190_vm0, %v169_v14 }
  0x4a   : > { %469 = vmatprep.subr.mxu0 %v583_v1 }
  0x4d   : > { %470 = vmatpush3.xpose.msk.msra.mxu0 %vm190_vm0, %v168_v15 }
  0x4e   : > { %471 = vmatprep.subr.mxu0 %v583_v1 }
  0x51   : > { %472 = vmatpush3.xpose.msk.msra.mxu0 %vm190_vm0, %v167_v16 }
  0x54   : > { %474 = vmatmul.mubr.msk.f32.vlgmr.msra.gmra.mxu0 %vm190_vm0, %v166_v17 }
 0x114   : > { %v308_v19 = vpop.f32.mrf.mxu0 }
 0x115   : > { %v309_v20 = vadd.f32 %v402_v18, %v308_v19 }
 0x116   : > { %v475_v21 = vpop.f32.mrf.mxu0 }
 0x117   : > { %312 = vmax.xlane.f32.xlu0 %v309_v20 }
 0x1a0   : > { %v313_v22 = vpop.xlane.xlu0 %312 }
 0x1a1   : > { %v314_v23 = vsub.f32 %v309_v20, %v313_v22 }
 0x1a3   : > { %v315_v24 = vmul.f32 1.442695, %v314_v23 }
 0x1a5   : > { %517 = vpow2.f32 %v315_v24 }
 0x1b2   : > { %v518_v25 = vpop.eup %517 }
 0x1b3   : > { %317 = vadd.xlane.f32.xlu0 %v518_v25 }
 0x23c   : > { %v318_v26 = vpop.xlane.xlu0 %317 }
 0x23d   : > { %519 = vlog2.f32 %v318_v26 }
 0x24a   : > { %v520_v27 = vpop.eup %519 }
 0x24b   : > { %v320_v28 = vmul.f32 0.6931472, %v520_v27 }
 0x24d   : > { %v321_v29 = vsub.f32 %v314_v23, %v320_v28 }
 0x24f   : > { %322 = vst [vmem:[%s161_s30] sm:$0xff] %v321_v29 }
 0x250   : > { %534 = shalt.err (!%p531_p3)
}
 0x251   : > { %s535_s17 = scalar_lea.hbm %s335_s7, 128  ;;  %s539_s24 = scalar_lea.hbm %s764_s3, 256 }
 0x252   : > { %p536_p4 = scmp.ne.s32.totalorder %s335_s7, %s535_s17  ;;  %p540_p9 = scmp.lt.s32.totalorder %s335_s7, %s764_s3 }
 0x253   : > { %p541_p10 = scmp.lt.s32.totalorder %s539_s24, %s535_s17 }
 0x254   : > { %p537_p7 = pnand %p536_p4, %p644_p5 }
 0x255   : > { %p542_p11 = por %p541_p10, %p540_p9 }
 0x256   : > { %p538_p8 = pneg %p537_p7 }
 0x258   : > { %p543_p12 = pnand %p542_p11, %p538_p8 }
 0x25a   : > { %546 = shalt.err (!%p543_p12)
}
 0x25b   : > { %476 = dma.vmem_to_hbm [thread:$0]  (%p644_p5), %s338_s4, 128, %s335_s7, %s324_s8  }
 0x25c PF: > { %p482_p13 = scmp.ge.s32.totalorder %s581_s15, 2  ;;  %s349_s27 = sand.u32 1, %s569_s12  }
 0x25d   : > { %s350_s28 = scalar_lea.sflag [#allocation3], %s349_s27 }
 0x25e   : > { %p479_p0 = pnand %p482_p13, %p648_p6 }
 0x260   : > { %p480_p1 = pneg %p479_p0 }
 0x262   : > { %564 = dma.done.wait (%p480_p1), %s350_s28, 128  }
 0x263   : > { %566 = vsyncadd (%p480_p1), %s350_s28, 4294967168  ;;  %p13_p2 = scmp.ge.s32.totalorder %s631_s18, 4   ;;  %s767_s12 = smov %s573_s13 }
 0x264   : > { %s768_s13 = smov %s577_s14  ;;  %s769_s14 = smov %s642_s21 }
 0x265   : > { %s770_s15 = smov %s631_s18  ;;  %15 = sbr.rel (!%p13_p2) target bundleno = 3 (0x3), region = 67 }
 0x26a   :  { %355 = vsyncpa [#allocation3], 1 }
 0x26b   :  { %357 = vsyncpa [#allocation3 + $0x1], 1 }

</bundles_post_ra>
